<compile_context>
chip_gen: v6e
topology: v6e:2x2x1
jax: 0.10.0
libtpu: 0.0.40
codegen_flags: <defaults>
</compile_context>

<pallas_src>
import functools

import jax
import jax.numpy as jnp
from jax.experimental import pallas as pl
from jax.experimental.pallas import tpu as pltpu


def _cdiv(a, b):
    return -(-a // b)


def _round_up(a, b):
    return _cdiv(a, b) * b


def _sublane(dtype):
    return {4: 8, 2: 16, 1: 32}.get(jnp.dtype(dtype).itemsize, 8)


def _num_tensorcores():
    """2 on megacore chips (v7x), else 1. Safe fallback to 1."""
    try:
        kind = jax.devices()[0].device_kind.lower()
    except Exception:
        return 1
    return 2 if ("v7" in kind or "7x" in kind) else 1


_VMEM_LIMIT = 32 * 1024 * 1024  # safe on v5e/v6e (128 MiB) and v7x (64 MiB)


def _row_tile_spec(tile_rows, width, steps, last_tile):
    # Clamp the logical block index so a (possibly) out-of-range logical tile
    # re-reads the last valid tile instead of DMA-ing past the array; the
    # kernel masks by the *logical* row index so re-read data contributes 0.
    return pl.BlockSpec(
        (tile_rows, width),
        lambda p, i, s=steps, m=last_tile: (jnp.minimum(p * s + i, m), 0),
    )


# --------------------------- MSE path (T is None) ---------------------------

def _mse_kernel(ys_ref, yt_ref, out_ref, acc_ref, *,
                n_valid_rows, tile_rows, steps, masked):
    p = pl.program_id(0)
    i = pl.program_id(1)

    @pl.when(i == 0)
    def _():
        out_ref[...] = jnp.zeros_like(out_ref)
        acc_ref[...] = jnp.zeros_like(acc_ref)

    d = ys_ref[...].astype(jnp.float32) - yt_ref[...].astype(jnp.float32)
    if masked:
        # Mask BEFORE squaring so garbage in the overhanging region (stale
        # VMEM / re-read rows) cannot propagate.
        row0 = (p * steps + i) * tile_rows
        rid = row0 + jax.lax.broadcasted_iota(jnp.int32, (tile_rows, 1), 0)
        d = jnp.where(rid < n_valid_rows, d, 0.0)

    acc_ref[...] += d * d  # pure VPU adds per step; no per-step XLU reduce

    @pl.when(i == pl.num_programs(1) - 1)
    def _():
        out_ref[...] += jnp.sum(acc_ref[...])


def _mse_pallas(y_s, y_t, *, tile_budget_bytes=4 << 20, max_tile_rows=None):
    N, C = y_s.shape
    total = N * C
    dt = jnp.dtype(y_s.dtype)
    sub = _sublane(dt)

    # Lane-dense flattened layout only when it is a free reshape (no pad).
    L = None
    for cand in (1024, 512, 256, 128):
        if total % cand == 0:
            L = cand
            break
    if L is not None:
        xs = y_s.reshape(total // L, L)
        xt = y_t.reshape(total // L, L)
    else:
        L = C
        xs, xt = y_s, y_t
    R = xs.shape[0]

    # Tile rows from a per-buffer byte budget using the lane-padded row size.
    row_vmem = _round_up(L, 128) * dt.itemsize
    tile_rows = max(sub, (tile_budget_bytes // row_vmem) // sub * sub)
    if max_tile_rows is not None:
        tile_rows = min(tile_rows, max(sub, (max_tile_rows // sub) * sub))
    tile_rows = min(tile_rows, R)  # == R (full dim) or a multiple of sub

    n_tiles = _cdiv(R, tile_rows)
    n_par = 2 if (_num_tensorcores() >= 2 and n_tiles >= 2) else 1
    steps = _cdiv(n_tiles, n_par)
    masked = (n_par * steps * tile_rows != R)

    kernel = functools.partial(
        _mse_kernel, n_valid_rows=R, tile_rows=tile_rows, steps=steps,
        masked=masked)

    partials = pl.pallas_call(
        kernel,
        out_shape=jax.ShapeDtypeStruct((n_par, 1, 1), jnp.float32),
        grid_spec=pltpu.PrefetchScalarGridSpec(
            num_scalar_prefetch=0,
            grid=(n_par, steps),
            in_specs=[
                _row_tile_spec(tile_rows, L, steps, n_tiles - 1),
                _row_tile_spec(tile_rows, L, steps, n_tiles - 1),
            ],
            out_specs=pl.BlockSpec((1, 1, 1), lambda p, i: (p, 0, 0)),
            scratch_shapes=[pltpu.VMEM((tile_rows, L), jnp.float32)],
        ),
        compiler_params=pltpu.CompilerParams(
            dimension_semantics=("parallel", "arbitrary"),
            vmem_limit_bytes=_VMEM_LIMIT,
        ),
        cost_estimate=pl.CostEstimate(
            flops=3 * total,
            transcendentals=0,
            bytes_accessed=2 * total * dt.itemsize + n_par * 4,
        ),
    )(xs, xt)
    return jnp.sum(partials) * (1.0 / float(total))


# ------------------------ KD path (T is not None) ---------------------------

def _kd_kernel(ys_ref, yt_ref, out_ref, *,
               inv_T, n_valid, tile_rows, steps, masked):
    p = pl.program_id(0)
    i = pl.program_id(1)

    @pl.when(i == 0)
    def _():
        out_ref[...] = jnp.zeros_like(out_ref)

    ys = ys_ref[...].astype(jnp.float32) * inv_T
    yt = yt_ref[...].astype(jnp.float32) * inv_T

    # log_softmax(y_s / T) over classes (dim=1). F.cross_entropy would apply
    # log_softmax again, but that is the identity on log-softmax outputs.
    m_s = jnp.max(ys, axis=1, keepdims=True)
    zs = ys - m_s
    log_p_s = zs - jnp.log(jnp.sum(jnp.exp(zs), axis=1, keepdims=True))

    # softmax(y_t / T): fold the normalisation into the row reduction so we do
    # ONE divide per row instead of C per-element divides.
    m_t = jnp.max(yt, axis=1, keepdims=True)
    e_t = jnp.exp(yt - m_t)
    s_t = jnp.sum(e_t, axis=1, keepdims=True)                   # (rows, 1)
    dot_t = jnp.sum(e_t * log_p_s, axis=1, keepdims=True)       # (rows, 1)
    per_row = -dot_t / s_t                                      # (rows, 1)

    if masked:
        # Rows that only exist because the last tile overhangs N.
        row0 = (p * steps + i) * tile_rows
        rid = row0 + jax.lax.broadcasted_iota(jnp.int32, per_row.shape, 0)
        per_row = jnp.where(rid < n_valid, per_row, 0.0)

    out_ref[...] += jnp.sum(per_row)


def _kd_pallas(y_s, y_t, T, *, tile_budget_bytes=2 << 20, max_tile_rows=None):
    N, C = y_s.shape
    dt = jnp.dtype(y_s.dtype)
    sub = _sublane(dt)

    # Tile rows from a VMEM byte budget using the lane-padded row footprint.
    row_vmem = _round_up(C, 128) * dt.itemsize
    tile_rows = max(sub, (tile_budget_bytes // row_vmem) // sub * sub)
    if max_tile_rows is not None:
        tile_rows = min(tile_rows, max(sub, (max_tile_rows // sub) * sub))
    tile_rows = min(tile_rows, N)  # == N (full dim) or a multiple of sub

    n_tiles = _cdiv(N, tile_rows)
    n_par = 2 if (_num_tensorcores() >= 2 and n_tiles >= 2) else 1
    steps = _cdiv(n_tiles, n_par)
    masked = (n_par * steps * tile_rows != N)

    kernel = functools.partial(
        _kd_kernel, inv_T=1.0 / T, n_valid=N, tile_rows=tile_rows,
        steps=steps, masked=masked)

    partials = pl.pallas_call(
        kernel,
        out_shape=jax.ShapeDtypeStruct((n_par, 1, 1), jnp.float32),
        grid_spec=pltpu.PrefetchScalarGridSpec(
            num_scalar_prefetch=0,
            grid=(n_par, steps),
            in_specs=[
                _row_tile_spec(tile_rows, C, steps, n_tiles - 1),
                _row_tile_spec(tile_rows, C, steps, n_tiles - 1),
            ],
            out_specs=pl.BlockSpec((1, 1, 1), lambda p, i: (p, 0, 0)),
        ),
        compiler_params=pltpu.CompilerParams(
            dimension_semantics=("parallel", "arbitrary"),
            vmem_limit_bytes=_VMEM_LIMIT,
        ),
        cost_estimate=pl.CostEstimate(
            flops=10 * N * C,
            transcendentals=2 * N * C,
            bytes_accessed=2 * N * C * dt.itemsize + n_par * 4,
        ),
    )(y_s, y_t)
    return jnp.sum(partials) * (T * T / float(N))


# ------------------------------- public API ----------------------------------

def output_mse_loss(y_s, y_t, T=None, *, max_tile_rows=None):
    """Pallas implementation of output_mse.forward(y_s, y_t). Logits are [N, C]."""
    assert y_s.shape == y_t.shape and y_s.ndim == 2
    if T is None:
        return _mse_pallas(y_s, y_t, max_tile_rows=max_tile_rows)
    return _kd_pallas(y_s, y_t, float(T), max_tile_rows=max_tile_rows)


def _reference(y_s, y_t, T=None):
    y_s = y_s.astype(jnp.float32)
    y_t = y_t.astype(jnp.float32)
    if T is None:
        return jnp.mean((y_s - y_t) ** 2)
    p_s = jax.nn.log_softmax(y_s / T, axis=1)
    p_t = jax.nn.softmax(y_t / T, axis=1)
    # F.cross_entropy re-applies log_softmax to its logits argument.
    return jnp.mean(-jnp.sum(p_t * jax.nn.log_softmax(p_s, axis=1), axis=1)) * (T ** 2)


if __name__ == "__main__":
    key = jax.random.PRNGKey(0)
    k1, k2, k3, k4 = jax.random.split(key, 4)

    # Case 1: small logits [batch=8, classes=32], single tile, both branches.
    y_s = jax.random.normal(k1, (8, 32), dtype=jnp.float32)
    y_t = jax.random.normal(k2, (8, 32), dtype=jnp.float32)
    out_mse = output_mse_loss(y_s, y_t, T=None)
    out_kd = output_mse_loss(y_s, y_t, T=4.0)
    jax.block_until_ready((out_mse, out_kd))
    assert jnp.allclose(out_mse, _reference(y_s, y_t, None), rtol=2e-5, atol=1e-5), (
        out_mse, _reference(y_s, y_t, None))
    assert jnp.allclose(out_kd, _reference(y_s, y_t, 4.0), rtol=2e-5, atol=1e-5), (
        out_kd, _reference(y_s, y_t, 4.0))

    # Case 2: ragged batch [42, 48] with tiny tiles -> exercises the multi-step
    # grid, overhanging (un-padded) last tile and in-kernel row masking.
    y_s2 = jax.random.normal(k3, (42, 48), dtype=jnp.float32)
    y_t2 = jax.random.normal(k4, (42, 48), dtype=jnp.float32)
    out_mse2 = output_mse_loss(y_s2, y_t2, T=None, max_tile_rows=8)
    out_kd2 = output_mse_loss(y_s2, y_t2, T=2.0, max_tile_rows=8)
    jax.block_until_ready((out_mse2, out_kd2))
    assert jnp.allclose(out_mse2, _reference(y_s2, y_t2, None), rtol=2e-5, atol=1e-5), (
        out_mse2, _reference(y_s2, y_t2, None))
    assert jnp.allclose(out_kd2, _reference(y_s2, y_t2, 2.0), rtol=2e-5, atol=1e-5), (
        out_kd2, _reference(y_s2, y_t2, 2.0))

    print("KERNEL_OK")
</pallas_src>

<mosaic_0001>
module attributes {stable_mosaic.version = 11 : i64} {
  func.func @_mse_kernel(%arg0: i32, %arg1: i32, %arg2: memref<1x256xf32, #tpu.memory_space<vmem>>, %arg3: memref<1x256xf32, #tpu.memory_space<vmem>>, %arg4: memref<1x1x1xf32, #tpu.memory_space<vmem>>, %arg5: memref<1x256xf32, #tpu.memory_space<vmem>>) attributes {dimension_semantics = [#tpu.dimension_semantics<parallel>, #tpu.dimension_semantics<arbitrary>], iteration_bounds = array<i64: 1, 1>, scalar_prefetch = 0 : i64, scratch_operands = 1 : i64, tpu.core_type = #tpu.core_type<tc>, window_params = [{transform_indices = @transform_0, window_bounds = array<i64: 1, 256>}, {transform_indices = @transform_1, window_bounds = array<i64: 1, 256>}, {transform_indices = @transform_2, window_bounds = array<i64: 1, 1, 1>}]} {
    %c0_i32 = arith.constant 0 : i32
    %0 = arith.cmpi eq, %arg1, %c0_i32 : i32
    %1 = arith.extui %0 : i1 to i32
    %c0_i32_0 = arith.constant 0 : i32
    %2 = arith.cmpi ne, %1, %c0_i32_0 : i32
    scf.if %2 {
      %cst = arith.constant 0.000000e+00 : f32
      %13 = vector.broadcast %cst : f32 to vector<1x1x1xf32>
      %c0_10 = arith.constant 0 : index
      %c0_11 = arith.constant 0 : index
      %c0_12 = arith.constant 0 : index
      %14 = vector.load %arg4[%c0_10, %c0_11, %c0_12] : memref<1x1x1xf32, #tpu.memory_space<vmem>>, vector<1x1x1xf32>
      tpu.vector_store %arg4[%c0_10, %c0_11, %c0_12], %13 {strides = array<i32>} : memref<1x1x1xf32, #tpu.memory_space<vmem>>, vector<1x1x1xf32>,
      %cst_13 = arith.constant 0.000000e+00 : f32
      %15 = vector.broadcast %cst_13 : f32 to vector<1x256xf32>
      %c0_14 = arith.constant 0 : index
      %c0_15 = arith.constant 0 : index
      %16 = vector.load %arg5[%c0_14, %c0_15] : memref<1x256xf32, #tpu.memory_space<vmem>>, vector<1x256xf32>
      tpu.vector_store %arg5[%c0_14, %c0_15], %15 {strides = array<i32>} : memref<1x256xf32, #tpu.memory_space<vmem>>, vector<1x256xf32>,
    } else {
    }
    %c0 = arith.constant 0 : index
    %c0_1 = arith.constant 0 : index
    %3 = vector.load %arg2[%c0, %c0_1] : memref<1x256xf32, #tpu.memory_space<vmem>>, vector<1x256xf32>
    %c0_2 = arith.constant 0 : index
    %c0_3 = arith.constant 0 : index
    %4 = vector.load %arg3[%c0_2, %c0_3] : memref<1x256xf32, #tpu.memory_space<vmem>>, vector<1x256xf32>
    %5 = arith.subf %3, %4 : vector<1x256xf32>
    %c0_4 = arith.constant 0 : index
    %c0_5 = arith.constant 0 : index
    %6 = vector.load %arg5[%c0_4, %c0_5] : memref<1x256xf32, #tpu.memory_space<vmem>>, vector<1x256xf32>
    %7 = arith.mulf %5, %5 : vector<1x256xf32>
    %8 = arith.addf %6, %7 : vector<1x256xf32>
    %c0_6 = arith.constant 0 : index
    %c0_7 = arith.constant 0 : index
    %9 = vector.load %arg5[%c0_6, %c0_7] : memref<1x256xf32, #tpu.memory_space<vmem>>, vector<1x256xf32>
    tpu.vector_store %arg5[%c0_6, %c0_7], %8 {strides = array<i32>} : memref<1x256xf32, #tpu.memory_space<vmem>>, vector<1x256xf32>,
    %c0_i32_8 = arith.constant 0 : i32
    %10 = arith.cmpi eq, %arg1, %c0_i32_8 : i32
    %11 = arith.extui %10 : i1 to i32
    %c0_i32_9 = arith.constant 0 : i32
    %12 = arith.cmpi ne, %11, %c0_i32_9 : i32
    scf.if %12 {
      %c0_10 = arith.constant 0 : index
      %c0_11 = arith.constant 0 : index
      %c0_12 = arith.constant 0 : index
      %13 = vector.load %arg4[%c0_10, %c0_11, %c0_12] : memref<1x1x1xf32, #tpu.memory_space<vmem>>, vector<1x1x1xf32>
      %c0_13 = arith.constant 0 : index
      %c0_14 = arith.constant 0 : index
      %14 = vector.load %arg5[%c0_13, %c0_14] : memref<1x256xf32, #tpu.memory_space<vmem>>, vector<1x256xf32>
      %15 = vector.shape_cast %14 : vector<1x256xf32> to vector<1x1x256xf32>
      %cst = arith.constant dense<0.000000e+00> : vector<1xf32>
      %16 = vector.multi_reduction <add>, %15, %cst [1, 2] : vector<1x1x256xf32> to vector<1xf32>
      %17 = vector.shape_cast %16 : vector<1xf32> to vector<1x1x1xf32>
      %18 = vector.extract %17[0, 0, 0] : f32 from vector<1x1x1xf32>
      %19 = vector.broadcast %18 : f32 to vector<1x1x1xf32>
      %20 = arith.addf %13, %19 : vector<1x1x1xf32>
      %c0_15 = arith.constant 0 : index
      %c0_16 = arith.constant 0 : index
      %c0_17 = arith.constant 0 : index
      %21 = vector.load %arg4[%c0_15, %c0_16, %c0_17] : memref<1x1x1xf32, #tpu.memory_space<vmem>>, vector<1x1x1xf32>
      tpu.vector_store %arg4[%c0_15, %c0_16, %c0_17], %20 {strides = array<i32>} : memref<1x1x1xf32, #tpu.memory_space<vmem>>, vector<1x1x1xf32>,
    } else {
    }
    return
  }
  func.func @transform_0(%arg0: i32, %arg1: i32) -> (i32, i32) {
    %c1_i32 = arith.constant 1 : i32
    %0 = arith.muli %arg0, %c1_i32 : i32
    %1 = arith.addi %0, %arg1 : i32
    %c0_i32 = arith.constant 0 : i32
    %2 = arith.minsi %1, %c0_i32 : i32
    %c0_i32_0 = arith.constant 0 : i32
    %c0_i32_1 = arith.constant 0 : i32
    return %2, %c0_i32_0 : i32, i32
  }
  func.func @transform_1(%arg0: i32, %arg1: i32) -> (i32, i32) {
    %c1_i32 = arith.constant 1 : i32
    %0 = arith.muli %arg0, %c1_i32 : i32
    %1 = arith.addi %0, %arg1 : i32
    %c0_i32 = arith.constant 0 : i32
    %2 = arith.minsi %1, %c0_i32 : i32
    %c0_i32_0 = arith.constant 0 : i32
    %c0_i32_1 = arith.constant 0 : i32
    return %2, %c0_i32_0 : i32, i32
  }
  func.func @transform_2(%arg0: i32, %arg1: i32) -> (i32, i32, i32) {
    %c0_i32 = arith.constant 0 : i32
    %c0_i32_0 = arith.constant 0 : i32
    %c0_i32_1 = arith.constant 0 : i32
    return %arg0, %c0_i32, %c0_i32_0 : i32, i32, i32
  }
}

</mosaic_0001>

<bundles_post_ra>
// kernel: tpu_custom_call.1
= control target key start
LH: loop header
LB: loop body
LE: loop exit
PB: predicated region body
PF: predicated region fallthrough
CT: control target
= control target key end

     0   :  { %7 = vsyncpa [#allocation4], 0  ;;  %s231_s0 = inlined_call_operand.hbm [shape: f32[1,256], index: 0, kind: input, shape index: {}]   ;;  %s232_s1 = inlined_call_operand.hbm [shape: f32[1,256], index: 1, kind: input, shape index: {}]   ;;  %s233_s2 = inlined_call_operand.hbm [shape: f32[1,1,1], index: 2, kind: output, shape index: {}]  }
   0x1   :  { %8 = vsyncpa [#allocation7], 0 }
   0x2   :  { %9 = vsyncpa [#allocation5], 0  ;;  %s201_s9 = smov [#allocation3]   ;;  %s202_s11 = smov [#allocation6]  }
   0x3   :  { %s22_s10 = sshll.u32 %s201_s9, 4  ;;  %s38_s12 = sshll.u32 %s202_s11, 4  ;;  %s23_s10 = int_to_ptr.vmem [resolvable:$true] %s22_s10  ;;  %s39_s12 = int_to_ptr.vmem [resolvable:$true] %s38_s12 }
   0x4   :  { %s143_s13 = scalar_lea.vmem %s23_s10, 32  ;;  %p148_p1 = scmp.lt.s32.totalorder %s23_s10, %s23_s10 }
   0x5   :  { %p144_p0 = scmp.ne.s32.totalorder %s23_s10, %s143_s13  ;;  %p149_p2 = scmp.lt.s32.totalorder %s143_s13, %s143_s13 }
   0x7   :  { %p150_p3 = por %p149_p2, %p148_p1 }
   0x9   :  { %p151_p4 = pnand %p150_p3, %p144_p0 }
   0xb   :  { %154 = shalt.err (!%p151_p4)
}
   0xc   :  { %25 = dma.hbm_to_vmem [thread:$0]  %s231_s0, 32, %s23_s10, [#allocation4]  }
   0xd   :  { %s163_s16 = scalar_lea.vmem %s39_s12, 32  ;;  %p168_p6 = scmp.lt.s32.totalorder %s39_s12, %s39_s12 }
   0xe   :  { %p164_p5 = scmp.ne.s32.totalorder %s39_s12, %s163_s16  ;;  %p169_p7 = scmp.lt.s32.totalorder %s163_s16, %s163_s16 }
  0x10   :  { %p170_p8 = por %p169_p7, %p168_p6 }
  0x12   :  { %p171_p9 = pnand %p170_p8, %p164_p5 }
  0x14   :  { %174 = shalt.err (!%p171_p9)
}
  0x15   :  { %41 = dma.hbm_to_vmem [thread:$0]  %s232_s1, 32, %s39_s12, [#allocation7]  }
  0x16   :  { %195 = dma.done.wait [#allocation4], 32  }
  0x17   :  { %196 = vsyncadd [#allocation4], 4294967264 }
  0x18   :  { %197 = dma.done.wait [#allocation7], 32  }
  0x19   :  { %198 = vsyncadd [#allocation7], 4294967264  ;;  %vm58_vm0 = vcmask 0   ;;  %v60_v0 = vlaneseq  ;;  %v203_v1 = vmov 0.0   ;;  %v65_v2 = vld [vmem:[#allocation3] sm:$0x3] }
  0x1a   :  { %59 = vst.msk [vmem:[#allocation8] sm:$0x1] %vm58_vm0, %v203_v1  ;;  %v66_v3 = vld [vmem:[#allocation6] sm:$0x3]  ;;  %vm92_vm2 = vcmask 1040384   ;;  %s204_s0 = smov [#allocation8]  }
  0x1b   :  { %vm62_vm1 = vcmp.lt.s32.totalorder %v60_v0, 256  ;;  %v67_v4 = vsub.f32 %v65_v2, %v66_v3  ;;  %v83_v8 = vshrl.u32 %v60_v0, 7  ;;  %s115_s1 = sshll.u32 %s204_s0, 4  ;;  %s116_s1 = int_to_ptr.vmem [resolvable:$true] %s115_s1 }
  0x1c   :  { %64 = vst.msk [vmem:[#allocation2] sm:$0x3] %vm62_vm1, %v203_v1  ;;  %s175_s20 = scalar_lea.vmem %s116_s1, 16  ;;  %s179_s21 = scalar_lea.vmem %s116_s1, 32 }
  0x1d   :  { %v69_v6 = vmul.f32 %v67_v4, %v67_v4  ;;  %v84_v9 = vsub.s32 0, %v83_v8  ;;  %v88_v10 = vsub.s32 1, %v83_v8  ;;  %p176_p10 = scmp.ne.s32.totalorder %s116_s1, %s175_s20  ;;  %p180_p11 = scmp.lt.s32.totalorder %s116_s1, %s116_s1 }
  0x1e   :  { %p181_p12 = scmp.lt.s32.totalorder %s179_s21, %s175_s20 }
  0x20   :  { %p182_p13 = por %p181_p12, %p180_p11 }
  0x21   :  { %v79_v24 = vld [vmem:[#allocation8] sm:$0x1] }
  0x22   :  { %p183_p0 = pnand %p182_p13, %p176_p10 }
  0x23   :  { %v68_v5 = vld [vmem:[#allocation2] sm:$0x3] }
  0x24   :  { %v70_v7 = vadd.f32 %v69_v6, %v68_v5 }
  0x26   :  { %75 = vst.msk [vmem:[#allocation2] sm:$0x3] %vm62_vm1, %v70_v7 }
  0x2d   :  { %v80_v11 = vld [vmem:[#allocation2] sm:$0x3] }
  0x2e   :  { %v85_v12 = vrot.slane %v80_v11, %v84_v9  ;;  %v89_v13 = vrot.slane %v80_v11, %v88_v10 }
  0x30   :  { %v93_v14 = vsel %vm92_vm2, %v85_v12, 0.0  ;;  %v94_v15 = vsel %vm92_vm2, %v89_v13, 0.0 }
  0x31   :  { %v95_v16 = vadd.f32 %v94_v15, %v93_v14 }
  0x33   :  { %96 = vadd.xlane.f32.xlu0 %v95_v16 }
  0xbc   :  { %v97_v17 = vpop.xlane.xlu0 %96 }
  0xbd   :  { %v98_v18 = vrot.slane %v97_v17, 4 }
  0xbf   :  { %v99_v19 = vadd.f32 %v98_v18, %v97_v17 }
  0xc1   :  { %v100_v20 = vrot.slane %v99_v19, 2 }
  0xc3   :  { %v101_v21 = vadd.f32 %v100_v20, %v99_v19 }
  0xc5   :  { %v102_v22 = vrot.slane %v101_v21, 1 }
  0xc7   :  { %v103_v23 = vadd.f32 %v102_v22, %v101_v21 }
  0xc9   :  { %129 = vpush %v103_v23 }
  0xfa   :  { %s130_s19 = spop %129 }
  0xfb   :  { %v105_v25 = vstv %s130_s19 }
  0xfc   :  { %v106_v26 = vadd.f32 %v105_v25, %v79_v24 }
  0xfe   :  { %108 = vst.msk [vmem:[#allocation8] sm:$0x1] %vm58_vm0, %v106_v26 }
  0xff   :  { %186 = shalt.err (!%p183_p0)
}
 0x100   :  { %118 = dma.vmem_to_hbm [thread:$0]  %s116_s1, 16, %s233_s2, [#allocation5]  }
 0x101   :  { %199 = dma.done.wait [#allocation5], 16  }
 0x102   :  { %200 = vsyncadd [#allocation5], 4294967280 }
 0x103   :  { %122 = vsyncpa [#allocation4], 1 }
 0x104   :  { %123 = vsyncpa [#allocation7], 1 }
 0x105   :  { %124 = vsyncpa [#allocation5], 1 }

</bundles_post_ra>
